<compile_context>
chip_gen: v7x
topology: tpu7x:2x2x1
jax: 0.10.0
libtpu: 0.0.40
codegen_flags: <defaults>
</compile_context>

<pallas_src>
import jax
import jax.numpy as jnp
from jax.experimental import pallas as pl
from jax.experimental.pallas import tpu as pltpu


# ----------------------------------------------------------------------------- kernel
def _fused_embed_kernel(x_ref, w1_ref, b1_ref, w2_ref, b2_ref, o_ref):
    """One M-tile of: tokens = relu(X @ W1 + b1) @ W2 + b2.

    The intermediate (tm, Fp) backbone activation is produced and consumed inside this
    grid step, so it never touches HBM (it stays in vregs / compiler VMEM).
    """
    x = x_ref[...]                                                   # (tm, K) compute dtype
    # backbone stage: conv(k=stride) as a GEMM; fp32 accumulation on the MXU
    feat = jnp.dot(x, w1_ref[...], preferred_element_type=jnp.float32)
    feat = jnp.maximum(feat + b1_ref[...], 0.0)                      # fp32 bias + ReLU epilogue
    # proj stage: 1x1 conv as a GEMM; feed the MXU in the compute dtype (bf16 or f32)
    feat = feat.astype(w2_ref.dtype)
    y = jnp.dot(feat, w2_ref[...], preferred_element_type=jnp.float32)
    y = y + b2_ref[...]                                              # fp32 bias epilogue
    o_ref[...] = y.astype(o_ref.dtype)


# ----------------------------------------------------------------------------- helpers
def _round_up(n, m):
    return pl.cdiv(n, m) * m


def _choose_tile_m(M, E, out_itemsize, tm_max, sublane):
    """Largest reasonable (sublane-aligned) M tile.

    The M axis is "parallel" so v7x megacore can shard it across both TensorCores,
    but a forced >=2-step split is only worth it when each step moves a meaningful
    amount of output (>= ~512 KiB).  For tiny workloads (and on single-TC v5e/v6e)
    a single big step avoids pipeline ramp + per-step overhead.
    """
    m_aligned = _round_up(M, sublane)
    tm = min(_round_up(tm_max, sublane), m_aligned)
    if tm < m_aligned:
        return tm                                   # already multiple grid steps
    half = _round_up(pl.cdiv(m_aligned, 2), sublane)
    if half >= sublane and half * E * out_itemsize >= (512 << 10):
        return half                                 # 2 steps, each worth a TensorCore's time
    return tm


def _vmem_limit_bytes(tm, K, Fp, E, in_itemsize, out_itemsize):
    """Explicit VMEM budget only when production-sized operands need it."""
    est = (2 * tm * K * in_itemsize                 # double-buffered X tiles
           + 2 * tm * E * out_itemsize              # double-buffered out tiles
           + 2 * (K * Fp + Fp * E) * in_itemsize    # resident weights (double-buffered by BlockSpec)
           + 2 * (Fp + E) * 4                       # biases (fp32)
           + tm * Fp * 4 + tm * E * 4)              # fp32 intermediate / accumulator
    if est <= (24 << 20):
        return None                                 # default 32 MiB scoped limit is plenty
    # Stay with headroom below v7x's 64 MiB physical VMEM (v6e/v5e have 128 MiB).
    return int(min(est * 2, 60 << 20))


# ----------------------------------------------------------------------------- wrapper
def fused_embed(xt, w1, b1, w2, b2, *, out_dtype, tm=512):
    """xt:(M,K)  w1:(K,Fp) b1:(Fp,)  w2:(Fp,E) b2:(E,)  ->  (M, E)."""
    M, K = xt.shape
    Kw, Fp = w1.shape
    Fw, E = w2.shape
    assert K == Kw and Fp == Fw

    in_itemsize = jnp.dtype(xt.dtype).itemsize
    out_itemsize = jnp.dtype(out_dtype).itemsize
    sublane = max(8, 32 // out_itemsize)            # 8 rows fp32, 16 bf16, 32 int8
    tm_eff = _choose_tile_m(M, E, out_itemsize, tm, sublane)
    grid_m = pl.cdiv(M, tm_eff)                     # ragged tail masked by Pallas, no pad/slice

    flops = 2 * M * (K * Fp + Fp * E)
    bytes_accessed = (M * K * in_itemsize
                      + (K * Fp + Fp * E) * in_itemsize
                      + (Fp + E) * 4
                      + M * E * out_itemsize)

    return pl.pallas_call(
        _fused_embed_kernel,
        out_shape=jax.ShapeDtypeStruct((M, E), out_dtype),
        grid=(grid_m,),
        in_specs=[
            pl.BlockSpec((tm_eff, K), lambda i: (i, 0)),   # token tile (streamed)
            # TODO(synk): on v7x with production-sized F/E, add pipeline_mode=pl.Buffered(1)
            # to the four constant-index specs below so resident weights/biases are not
            # double-buffered (frees (K*Fp + Fp*E)*dtype bytes of VMEM for free).
            pl.BlockSpec((K, Fp), lambda i: (0, 0)),       # backbone weight (resident)
            pl.BlockSpec((1, Fp), lambda i: (0, 0)),       # backbone bias   (fp32)
            pl.BlockSpec((Fp, E), lambda i: (0, 0)),       # proj weight     (resident)
            pl.BlockSpec((1, E), lambda i: (0, 0)),        # proj bias       (fp32)
        ],
        out_specs=pl.BlockSpec((tm_eff, E), lambda i: (i, 0)),
        compiler_params=pltpu.CompilerParams(
            dimension_semantics=("parallel",),
            vmem_limit_bytes=_vmem_limit_bytes(tm_eff, K, Fp, E, in_itemsize, out_itemsize)),
        cost_estimate=pl.CostEstimate(flops=flops, transcendentals=0,
                                      bytes_accessed=bytes_accessed),
    )(xt, w1, b1.reshape(1, Fp), w2, b2.reshape(1, E))


def _nchw_to_patch_tokens(x, kh, kw, dtype):
    """(B,C,H,W) -> (B*Ho*Wo, C*kh*kw), for kernel_size == stride == (kh, kw)."""
    B, C, H, W = x.shape
    Ho, Wo = H // kh, W // kw
    # Cast BEFORE the relayout so the unavoidable XLA transpose moves the compute dtype
    # (halves its HBM traffic on the bf16 path).
    x = x.astype(dtype).reshape(B, C, Ho, kh, Wo, kw)
    # TODO(synk): this patch relayout stays in XLA — a rectangular BlockSpec cannot express
    # the (c,kh,kw)-minor gather from NCHW, and an in-kernel 5-D transpose is not reliably
    # lowerable.  (NHWC inputs would make it a pure reshape.)
    x = jnp.transpose(x, (0, 2, 4, 1, 3, 5))                          # (B,Ho,Wo,C,kh,kw)
    return x.reshape(B * Ho * Wo, C * kh * kw), (B, Ho, Wo)


def hybrid_embed_forward(x, params, *, compute_dtype=jnp.float32, tm=512):
    """Returns (tokens (B, N, E), feat_size (Hf, Wf)) — mirrors the torch forward.

    compute_dtype=jnp.bfloat16 is the recommended perf mode on v5e, v6e and v7x alike
    (bf16 MXU inputs, fp32 accumulation, fp32 bias/ReLU epilogues).
    """
    bw, bb = params["backbone_w"], params["backbone_b"]              # (F, Cin, kh, kw), (F,)
    F_out, Cin, kh, kw = bw.shape
    xt, (B, Hf, Wf) = _nchw_to_patch_tokens(x, kh, kw, compute_dtype)

    pw, pb = params["proj_w"], params["proj_b"]                      # (E, F, 1, 1), (E,)
    E = pw.shape[0]
    K = Cin * kh * kw

    # Zero-pad the hidden width F up to a lane multiple (128).  Inert through the ReLU
    # because the padded W2 rows are zero, but keeps the (tm, Fp) intermediate lane-dense.
    Fp = _round_up(F_out, 128)
    w1 = bw.reshape(F_out, K).T                                      # (K, F)
    w2 = pw.reshape(E, F_out).T                                      # (F, E)
    b1 = bb.astype(jnp.float32)
    if Fp != F_out:
        w1 = jnp.pad(w1, ((0, 0), (0, Fp - F_out)))
        w2 = jnp.pad(w2, ((0, Fp - F_out), (0, 0)))
        b1 = jnp.pad(b1, (0, Fp - F_out))
    w1 = w1.astype(compute_dtype)
    w2 = w2.astype(compute_dtype)

    y = fused_embed(xt, w1, b1, w2, pb.astype(jnp.float32),
                    out_dtype=compute_dtype, tm=tm)                  # (B*Hf*Wf, E)

    # flatten(2).transpose(1,2) of the NCHW conv output == (B, Hf*Wf, E) row-major
    tokens = y.reshape(B, Hf * Wf, E)
    return tokens, (Hf, Wf)


# ----------------------------------------------------------------------------- params
def init_params(key, in_chans=3, backbone_feat=32, embed_dim=128):
    # embed_dim kept a multiple of 128 so the kernel's output stores are lane-dense;
    # backbone_feat=32 deliberately exercises the F->128 zero-padding path.
    k1, k2, k3, k4 = jax.random.split(key, 4)
    return {
        "backbone_w": jax.random.normal(k1, (backbone_feat, in_chans, 2, 2), jnp.float32) * 0.1,
        "backbone_b": jax.random.normal(k2, (backbone_feat,), jnp.float32) * 0.1,
        "proj_w":     jax.random.normal(k3, (embed_dim, backbone_feat, 1, 1), jnp.float32) * 0.1,
        "proj_b":     jax.random.normal(k4, (embed_dim,), jnp.float32) * 0.1,
    }
    # TODO(synk): real timm backbones (ResNet/EfficientNet stages) are arbitrary nn.Modules;
    # a single conv(k=2,s=2)+ReLU stage stands in for backbone(x) here.


# ----------------------------------------------------------------------------- reference
def _reference(x, params):
    feat = jax.lax.conv_general_dilated(
        x, params["backbone_w"], window_strides=(2, 2), padding="VALID",
        dimension_numbers=("NCHW", "OIHW", "NCHW"))
    feat = jnp.maximum(feat + params["backbone_b"][None, :, None, None], 0.0)
    y = jax.lax.conv_general_dilated(
        feat, params["proj_w"], window_strides=(1, 1), padding="VALID",
        dimension_numbers=("NCHW", "OIHW", "NCHW"))
    y = y + params["proj_b"][None, :, None, None]
    B, E, Hf, Wf = y.shape
    return jnp.transpose(y.reshape(B, E, Hf * Wf), (0, 2, 1)), (Hf, Wf)


if __name__ == "__main__":
    key = jax.random.PRNGKey(0)
    kx, kp = jax.random.split(key)
    x = jax.random.normal(kx, (2, 3, 16, 16), jnp.float32)           # NCHW like PyTorch
    params = init_params(kp)

    ref_tokens, ref_size = _reference(x, params)

    # fp32 compute path.  Tolerance is moderate because both the kernel's MXU matmuls
    # and the XLA reference convs may run f32 operands through bf16 MXU passes at
    # default precision.
    tokens, feat_size = hybrid_embed_forward(x, params, compute_dtype=jnp.float32)
    tokens = jax.block_until_ready(tokens)
    assert tokens.shape == (2, 8 * 8, 128), tokens.shape
    assert tuple(feat_size) == tuple(ref_size)
    assert jnp.allclose(tokens, ref_tokens, atol=1e-2, rtol=1e-2)

    # bf16 MXU path (recommended perf mode on v5e/v6e/v7x) — fp32 accumulation,
    # looser tolerance for the bf16-cast inputs/weights/outputs.
    tokens_bf16, feat_size_bf16 = hybrid_embed_forward(x, params, compute_dtype=jnp.bfloat16)
    tokens_bf16 = jax.block_until_ready(tokens_bf16)
    assert tokens_bf16.shape == (2, 8 * 8, 128), tokens_bf16.shape
    assert tuple(feat_size_bf16) == tuple(ref_size)
    assert jnp.allclose(tokens_bf16.astype(jnp.float32), ref_tokens, atol=5e-2, rtol=5e-2)

    print("KERNEL_OK")
</pallas_src>

<mosaic_0001>
module attributes {stable_mosaic.version = 11 : i64} {
  func.func @_fused_embed_kernel(%arg0: i32, %arg1: memref<128x12xf32, #tpu.memory_space<vmem>>, %arg2: memref<12x128xf32, #tpu.memory_space<vmem>>, %arg3: memref<1x128xf32, #tpu.memory_space<vmem>>, %arg4: memref<128x128xf32, #tpu.memory_space<vmem>>, %arg5: memref<1x128xf32, #tpu.memory_space<vmem>>, %arg6: memref<128x128xf32, #tpu.memory_space<vmem>>) attributes {dimension_semantics = [#tpu.dimension_semantics<parallel>], iteration_bounds = array<i64: 1>, scalar_prefetch = 0 : i64, scratch_operands = 0 : i64, tpu.core_type = #tpu.core_type<tc>, window_params = [{transform_indices = @transform_0, window_bounds = array<i64: 128, 12>}, {pipeline_mode = #tpu.pipeline_mode<synchronous>, transform_indices = @transform_1, window_bounds = array<i64: 12, 128>}, {pipeline_mode = #tpu.pipeline_mode<synchronous>, transform_indices = @transform_2, window_bounds = array<i64: 1, 128>}, {pipeline_mode = #tpu.pipeline_mode<synchronous>, transform_indices = @transform_3, window_bounds = array<i64: 128, 128>}, {pipeline_mode = #tpu.pipeline_mode<synchronous>, transform_indices = @transform_4, window_bounds = array<i64: 1, 128>}, {transform_indices = @transform_5, window_bounds = array<i64: 128, 128>}]} {
    %c0 = arith.constant 0 : index
    %c0_0 = arith.constant 0 : index
    %0 = vector.load %arg1[%c0, %c0_0] : memref<128x12xf32, #tpu.memory_space<vmem>>, vector<128x12xf32>
    %c0_1 = arith.constant 0 : index
    %c0_2 = arith.constant 0 : index
    %1 = vector.load %arg2[%c0_1, %c0_2] : memref<12x128xf32, #tpu.memory_space<vmem>>, vector<12x128xf32>
    %cst = arith.constant dense<0.000000e+00> : vector<128x128xf32>
    %2 = tpu.matmul %0, %1, %cst {dimension_numbers = #tpu.dot_dimension_numbers<[1], [0], [0], [1], [0, 0, 1, 1], [], []>} : vector<128x12xf32>, vector<12x128xf32>, vector<128x128xf32> -> vector<128x128xf32>
    %c0_3 = arith.constant 0 : index
    %c0_4 = arith.constant 0 : index
    %3 = vector.load %arg3[%c0_3, %c0_4] : memref<1x128xf32, #tpu.memory_space<vmem>>, vector<1x128xf32>
    %4 = vector.broadcast %3 : vector<1x128xf32> to vector<128x128xf32>
    %5 = arith.addf %2, %4 : vector<128x128xf32>
    %cst_5 = arith.constant 0.000000e+00 : f32
    %6 = vector.broadcast %cst_5 : f32 to vector<128x128xf32>
    %7 = arith.maximumf %5, %6 : vector<128x128xf32>
    %c0_6 = arith.constant 0 : index
    %c0_7 = arith.constant 0 : index
    %8 = vector.load %arg4[%c0_6, %c0_7] : memref<128x128xf32, #tpu.memory_space<vmem>>, vector<128x128xf32>
    %cst_8 = arith.constant dense<0.000000e+00> : vector<128x128xf32>
    %9 = tpu.matmul %7, %8, %cst_8 {dimension_numbers = #tpu.dot_dimension_numbers<[1], [0], [0], [1], [0, 0, 1, 1], [], []>} : vector<128x128xf32>, vector<128x128xf32>, vector<128x128xf32> -> vector<128x128xf32>
    %c0_9 = arith.constant 0 : index
    %c0_10 = arith.constant 0 : index
    %10 = vector.load %arg5[%c0_9, %c0_10] : memref<1x128xf32, #tpu.memory_space<vmem>>, vector<1x128xf32>
    %11 = vector.broadcast %10 : vector<1x128xf32> to vector<128x128xf32>
    %12 = arith.addf %9, %11 : vector<128x128xf32>
    %c0_11 = arith.constant 0 : index
    %c0_12 = arith.constant 0 : index
    %13 = vector.load %arg6[%c0_11, %c0_12] : memref<128x128xf32, #tpu.memory_space<vmem>>, vector<128x128xf32>
    tpu.vector_store %arg6[%c0_11, %c0_12], %12 {strides = array<i32>} : memref<128x128xf32, #tpu.memory_space<vmem>>, vector<128x128xf32>,
    return
  }
  func.func @transform_0(%arg0: i32) -> (i32, i32) {
    %c0_i32 = arith.constant 0 : i32
    %c0_i32_0 = arith.constant 0 : i32
    return %arg0, %c0_i32 : i32, i32
  }
  func.func @transform_1(%arg0: i32) -> (i32, i32) {
    %c0_i32 = arith.constant 0 : i32
    %c0_i32_0 = arith.constant 0 : i32
    %c0_i32_1 = arith.constant 0 : i32
    return %c0_i32, %c0_i32_0 : i32, i32
  }
  func.func @transform_2(%arg0: i32) -> (i32, i32) {
    %c0_i32 = arith.constant 0 : i32
    %c0_i32_0 = arith.constant 0 : i32
    %c0_i32_1 = arith.constant 0 : i32
    return %c0_i32, %c0_i32_0 : i32, i32
  }
  func.func @transform_3(%arg0: i32) -> (i32, i32) {
    %c0_i32 = arith.constant 0 : i32
    %c0_i32_0 = arith.constant 0 : i32
    %c0_i32_1 = arith.constant 0 : i32
    return %c0_i32, %c0_i32_0 : i32, i32
  }
  func.func @transform_4(%arg0: i32) -> (i32, i32) {
    %c0_i32 = arith.constant 0 : i32
    %c0_i32_0 = arith.constant 0 : i32
    %c0_i32_1 = arith.constant 0 : i32
    return %c0_i32, %c0_i32_0 : i32, i32
  }
  func.func @transform_5(%arg0: i32) -> (i32, i32) {
    %c0_i32 = arith.constant 0 : i32
    %c0_i32_0 = arith.constant 0 : i32
    return %arg0, %c0_i32 : i32, i32
  }
}

</mosaic_0001>

<bundles_post_ra>
// kernel: tpu_custom_call.1
= control target key start
LH: loop header
LB: loop body
LE: loop exit
PB: predicated region body
PF: predicated region fallthrough
CT: control target
= control target key end

     0   :  { %vm95_vm0 = vcmask 1043456   ;;  %vm695_vm1 = vmmov 1   ;;  %vm46_vm3 = vcmask 97280   ;;  %s865_s0 = inlined_call_operand.vmem [shape: f32[128,12], index: 0, kind: input, shape index: {}]   ;;  %s866_s1 = inlined_call_operand.vmem [shape: f32[12,128], index: 1, kind: input, shape index: {}]   ;;  %s867_s2 = inlined_call_operand.vmem [shape: f32[1,128], index: 2, kind: input, shape index: {}]   ;;  %s868_s3 = inlined_call_operand.vmem [shape: f32[128,128], index: 3, kind: input, shape index: {}]   ;;  %s869_s4 = inlined_call_operand.vmem [shape: f32[1,128], index: 4, kind: input, shape index: {}]   ;;  %s870_s5 = inlined_call_operand.hbm [shape: f32[128,128], index: 5, kind: output, shape index: {}]  }
   0x1   :  { %v37_v0 = vld [vmem:[%s866_s1] sm:$0xff]  ;;  %v38_v1 = vld [vmem:[%s866_s1 + $0x8] sm:$0xf]  ;;  %vm614_vm2 = vmpackc.low %vm95_vm0, %vm695_vm1 }
   0x2   :  { %v21_v2 = vld [vmem:[%s865_s0] sm:$0xff]  ;;  %v613_v3 = vpack.c.bf16 %v38_v1, %v37_v0  ;;  %v22_v4 = vld [vmem:[%s865_s0 + $0x8] sm:$0xff]  ;;  %v23_v5 = vld [vmem:[%s865_s0 + $0x10] sm:$0xff] }
   0x3   :  { %533 = vmatprep.mubr.msk.f32.mxu0 %vm46_vm3, %v21_v2  ;;  %v260_v6 = vld [vmem:[%s868_s3] sm:$0xff]  ;;  %v261_v7 = vld [vmem:[%s868_s3 + $0x8] sm:$0xff]  ;;  %v262_v9 = vld [vmem:[%s868_s3 + $0x10] sm:$0xff] }
   0x4   :  { %615 = vmatprep.subr.msk.bf16.mxu0 %vm614_vm2, %v613_v3  ;;  %v619_v8 = vpack.c.bf16 %v261_v7, %v260_v6  ;;  %v263_v10 = vld [vmem:[%s868_s3 + $0x18] sm:$0xff]  ;;  %v264_v13 = vld [vmem:[%s868_s3 + $0x20] sm:$0xff]  ;;  %v265_v14 = vld [vmem:[%s868_s3 + $0x28] sm:$0xff] }
   0x5   :  { %618 = vmatpush3.bf16.msk.msra.mxu0 %vm614_vm2, %v613_v3  ;;  %v24_v11 = vld [vmem:[%s865_s0 + $0x18] sm:$0xff]  ;;  %v623_v12 = vpack.c.bf16 %v263_v10, %v262_v9  ;;  %v25_v15 = vld [vmem:[%s865_s0 + $0x20] sm:$0xff]  ;;  %v627_v16 = vpack.c.bf16 %v265_v14, %v264_v13 }
   0x6   :  { %620 = vmatprep.subr.bf16.mxu0 %v619_v8  ;;  %651 = vmatprep.subr.bf16.mxu1 %v619_v8 }
   0x7   :  { %659 = vmatpush3.bf16.msra.mxu1 %v619_v8 }
   0x8   :  { %534 = vmatmul.mubr.msk.f32.vlgmr.msra.gmra.mrb[0].mxu0 %vm46_vm3, %v22_v4 }
   0x9   :  { %536 = vmatprep.mubr.msk.f32.mxu0 %vm46_vm3, %v23_v5  ;;  %622 = vmatpush3.bf16.msra.mxu0 %v619_v8 }
   0xa   :  { %624 = vmatprep.subr.bf16.mxu0 %v623_v12 }
   0xc   :  { %537 = vmatmul.mubr.msk.f32.gmra.mrb[2].mxu0 %vm46_vm3, %v24_v11 }
   0xd   :  { %10 = vsyncpa [#allocation3], 0  ;;  %539 = vmatprep.mubr.msk.f32.mxu0 %vm46_vm3, %v25_v15  ;;  %v26_v17 = vld [vmem:[%s865_s0 + $0x28] sm:$0xff]  ;;  %v266_v18 = vld [vmem:[%s868_s3 + $0x30] sm:$0xff]  ;;  %652 = vmatprep.subr.bf16.mxu1 %v623_v12 }
   0xe   :  { %v267_v19 = vld [vmem:[%s868_s3 + $0x38] sm:$0xff]  ;;  %v27_v20 = vld [vmem:[%s865_s0 + $0x30] sm:$0xff]  ;;  %626 = vmatpush3.bf16.msra.mxu0 %v623_v12  ;;  %660 = vmatpush3.bf16.msra.mxu1 %v623_v12  ;;  %v268_v23 = vld [vmem:[%s868_s3 + $0x40] sm:$0xff] }
   0xf   :  { %628 = vmatprep.subr.bf16.mxu0 %v627_v16  ;;  %v631_v21 = vpack.c.bf16 %v267_v19, %v266_v18  ;;  %v28_v22 = vld [vmem:[%s865_s0 + $0x38] sm:$0xff]  ;;  %v269_v24 = vld [vmem:[%s868_s3 + $0x48] sm:$0xff]  ;;  %653 = vmatprep.subr.bf16.mxu1 %v627_v16  ;;  %v29_v25 = vld [vmem:[%s865_s0 + $0x40] sm:$0xff] }
  0x10   :  { %540 = vmatmul.mubr.msk.f32.gmra.mrb[4].mxu0 %vm46_vm3, %v26_v17  ;;  %v635_v26 = vpack.c.bf16 %v269_v24, %v268_v23  ;;  %v30_v27 = vld [vmem:[%s865_s0 + $0x48] sm:$0xff]  ;;  %v270_v28 = vld [vmem:[%s868_s3 + $0x50] sm:$0xff]  ;;  %v271_v29 = vld [vmem:[%s868_s3 + $0x58] sm:$0xff] }
  0x11   :  { %542 = vmatprep.mubr.msk.f32.mxu0 %vm46_vm3, %v27_v20  ;;  %v31_v30 = vld [vmem:[%s865_s0 + $0x50] sm:$0xff]  ;;  %v639_v31 = vpack.c.bf16 %v271_v29, %v270_v28  ;;  %v32_v32 = vld [vmem:[%s865_s0 + $0x58] sm:$0xff]  ;;  %v272_v33 = vld [vmem:[%s868_s3 + $0x60] sm:$0xff] }
  0x12   :  { %630 = vmatpush3.bf16.msra.mxu0 %v627_v16  ;;  %661 = vmatpush3.bf16.msra.mxu1 %v627_v16  ;;  %v273_v34 = vld [vmem:[%s868_s3 + $0x68] sm:$0xff]  ;;  %v33_v35 = vld [vmem:[%s865_s0 + $0x60] sm:$0xff]  ;;  %v35_v38 = vld [vmem:[%s865_s0 + $0x70] sm:$0xff] }
  0x13   :  { %632 = vmatprep.subr.bf16.mxu0 %v631_v21  ;;  %654 = vmatprep.subr.bf16.mxu1 %v631_v21  ;;  %v643_v36 = vpack.c.bf16 %v273_v34, %v272_v33  ;;  %v34_v37 = vld [vmem:[%s865_s0 + $0x68] sm:$0xff]  ;;  %v36_v39 = vld [vmem:[%s865_s0 + $0x78] sm:$0xff]  ;;  %v274_v40 = vld [vmem:[%s868_s3 + $0x70] sm:$0xff] }
  0x14   :  { %543 = vmatmul.mubr.msk.f32.gmra.mrb[6].mxu0 %vm46_vm3, %v28_v22  ;;  %v275_v41 = vld [vmem:[%s868_s3 + $0x78] sm:$0xff]  ;;  %v460_v43 = vld [vmem:[%s867_s2] ss:$0 sm:$0xff] }
  0x15   :  { %545 = vmatprep.mubr.msk.f32.mxu0 %vm46_vm3, %v29_v25  ;;  %v647_v42 = vpack.c.bf16 %v275_v41, %v274_v40  ;;  %v478_v28 = vld [vmem:[%s869_s4] ss:$0 sm:$0xff]  ;;  %s696_s4 = smov [#allocation2]  }
  0x16   :  { %634 = vmatpush3.bf16.msra.mxu0 %v631_v21  ;;  %662 = vmatpush3.bf16.msra.mxu1 %v631_v21  ;;  %s449_s9 = sshll.u32 %s696_s4, 4  ;;  %s450_s9 = int_to_ptr.vmem [resolvable:$true] %s449_s9 }
  0x17   :  { %636 = vmatprep.subr.bf16.mxu0 %v635_v26  ;;  %655 = vmatprep.subr.bf16.mxu1 %v635_v26  ;;  %s671_s10 = scalar_lea.vmem %s450_s9, 2048  ;;  %p676_p1 = scmp.lt.s32.totalorder %s450_s9, %s450_s9 }
  0x18   :  { %546 = vmatmul.mubr.msk.f32.gmra.mrb[8].mxu0 %vm46_vm3, %v30_v27  ;;  %p672_p0 = scmp.ne.s32.totalorder %s450_s9, %s671_s10  ;;  %p677_p2 = scmp.lt.s32.totalorder %s671_s10, %s671_s10 }
  0x19   :  { %548 = vmatprep.mubr.msk.f32.mxu0 %vm46_vm3, %v31_v30 }
  0x1a   :  { %638 = vmatpush3.bf16.msra.mxu0 %v635_v26  ;;  %663 = vmatpush3.bf16.msra.mxu1 %v635_v26  ;;  %p678_p3 = por %p677_p2, %p676_p1 }
  0x1b   :  { %640 = vmatprep.subr.bf16.mxu0 %v639_v31  ;;  %656 = vmatprep.subr.bf16.mxu1 %v639_v31 }
  0x1c   :  { %549 = vmatmul.mubr.msk.f32.gmra.mrb[10].mxu0 %vm46_vm3, %v32_v32  ;;  %p679_p4 = pnand %p678_p3, %p672_p0 }
  0x1d   :  { %551 = vmatprep.mubr.msk.f32.mxu0 %vm46_vm3, %v33_v35 }
  0x1e   :  { %642 = vmatpush3.bf16.msra.mxu0 %v639_v31  ;;  %664 = vmatpush3.bf16.msra.mxu1 %v639_v31 }
  0x1f   :  { %644 = vmatprep.subr.bf16.mxu0 %v643_v36  ;;  %657 = vmatprep.subr.bf16.mxu1 %v643_v36 }
  0x20   :  { %552 = vmatmul.mubr.msk.f32.gmra.mrb[12].mxu0 %vm46_vm3, %v34_v37 }
  0x21   :  { %554 = vmatprep.mubr.msk.f32.mxu0 %vm46_vm3, %v35_v38 }
  0x22   :  { %646 = vmatpush3.bf16.msra.mxu0 %v643_v36  ;;  %665 = vmatpush3.bf16.msra.mxu1 %v643_v36 }
  0x23   :  { %648 = vmatprep.subr.bf16.mxu0 %v647_v42  ;;  %658 = vmatprep.subr.bf16.mxu1 %v647_v42 }
  0x24   :  { %555 = vmatmul.mubr.msk.f32.gmra.mrb[14].mxu0 %vm46_vm3, %v36_v39 }
  0x26   :  { %650 = vmatpush3.bf16.msra.mxu0 %v647_v42  ;;  %666 = vmatpush3.bf16.msra.mxu1 %v647_v42 }
  0xdb   :  { %v535_v44 = vpop.f32.mrb[0].mxu0 }
  0xdc   :  { %v171_v45 = vadd.f32 %v535_v44, %v460_v43  ;;  %v165_v46 = vpop.f32.mrb[1].mxu0 }
  0xdd   :  { %v166_v47 = vadd.f32 %v460_v43, %v165_v46 }
  0xde   :  { %v245_v50 = vmax.f32 %v171_v45, 0.0 }
  0xdf   :  { %v244_v48 = vmax.f32 %v166_v47, 0.0  ;;  %v538_v49 = vpop.f32.mrb[2].mxu0 }
  0xe0   :  { %v181_v51 = vadd.f32 %v538_v49, %v460_v43  ;;  %v175_v52 = vpop.f32.mrb[3].mxu0 }
  0xe1   :  { %v176_v53 = vadd.f32 %v460_v43, %v175_v52  ;;  %589 = vmatprep.mubr.f32.mxu0 %v244_v48 }
  0xe2   :  { %590 = vmatmul.mubr.f32.vlgmr.msra.gmra.mrb[16].mxu0 %v245_v50  ;;  %v247_v56 = vmax.f32 %v181_v51, 0.0 }
  0xe3   :  { %v246_v54 = vmax.f32 %v176_v53, 0.0  ;;  %v541_v55 = vpop.f32.mrb[4].mxu0 }
  0xe4   :  { %v191_v57 = vadd.f32 %v541_v55, %v460_v43  ;;  %v185_v58 = vpop.f32.mrb[5].mxu0 }
  0xe5   :  { %v186_v59 = vadd.f32 %v460_v43, %v185_v58  ;;  %592 = vmatprep.mubr.f32.mxu0 %v246_v54 }
  0xe6   :  { %593 = vmatmul.mubr.f32.gmra.mrb[18].mxu0 %v247_v56  ;;  %v249_v62 = vmax.f32 %v191_v57, 0.0 }
  0xe7   :  { %v248_v60 = vmax.f32 %v186_v59, 0.0  ;;  %v544_v61 = vpop.f32.mrb[6].mxu0 }
  0xe8   :  { %v201_v63 = vadd.f32 %v544_v61, %v460_v43  ;;  %v195_v0 = vpop.f32.mrb[7].mxu0 }
  0xe9   :  { %595 = vmatprep.mubr.f32.mxu0 %v248_v60  ;;  %v196_v1 = vadd.f32 %v460_v43, %v195_v0 }
  0xea   :  { %596 = vmatmul.mubr.f32.gmra.mrb[20].mxu0 %v249_v62  ;;  %v251_v4 = vmax.f32 %v201_v63, 0.0 }
  0xeb   :  { %v547_v2 = vpop.f32.mrb[8].mxu0  ;;  %v250_v3 = vmax.f32 %v196_v1, 0.0 }
  0xec   :  { %v211_v5 = vadd.f32 %v547_v2, %v460_v43  ;;  %v205_v6 = vpop.f32.mrb[9].mxu0 }
  0xed   :  { %v206_v7 = vadd.f32 %v460_v43, %v205_v6  ;;  %598 = vmatprep.mubr.f32.mxu1 %v250_v3 }
  0xee   :  { %599 = vmatmul.mubr.f32.vlgmr.msra.gmra.mrb[0].mxu1 %v251_v4  ;;  %v253_v10 = vmax.f32 %v211_v5, 0.0 }
  0xef   :  { %v252_v8 = vmax.f32 %v206_v7, 0.0  ;;  %v550_v9 = vpop.f32.mrb[10].mxu0 }
  0xf0   :  { %v221_v11 = vadd.f32 %v550_v9, %v460_v43  ;;  %v215_v12 = vpop.f32.mrb[11].mxu0 }
  0xf1   :  { %v216_v13 = vadd.f32 %v460_v43, %v215_v12  ;;  %601 = vmatprep.mubr.f32.mxu1 %v252_v8 }
  0xf2   :  { %602 = vmatmul.mubr.f32.gmra.mrb[2].mxu1 %v253_v10  ;;  %v255_v16 = vmax.f32 %v221_v11, 0.0 }
  0xf3   :  { %v254_v14 = vmax.f32 %v216_v13, 0.0  ;;  %v553_v15 = vpop.f32.mrb[12].mxu0 }
  0xf4   :  { %v231_v17 = vadd.f32 %v553_v15, %v460_v43  ;;  %v225_v18 = vpop.f32.mrb[13].mxu0 }
  0xf5   :  { %v226_v19 = vadd.f32 %v460_v43, %v225_v18  ;;  %604 = vmatprep.mubr.f32.mxu1 %v254_v14 }
  0xf6   :  { %605 = vmatmul.mubr.f32.gmra.mrb[4].mxu1 %v255_v16  ;;  %v257_v22 = vmax.f32 %v231_v17, 0.0 }
  0xf7   :  { %v256_v20 = vmax.f32 %v226_v19, 0.0  ;;  %v556_v21 = vpop.f32.mrb[14].mxu0 }
  0xf8   :  { %v241_v23 = vadd.f32 %v556_v21, %v460_v43  ;;  %v235_v24 = vpop.f32.mrb[15].mxu0 }
  0xf9   :  { %v236_v25 = vadd.f32 %v460_v43, %v235_v24  ;;  %607 = vmatprep.mubr.f32.mxu1 %v256_v20 }
  0xfa   :  { %608 = vmatmul.mubr.f32.gmra.mrb[6].mxu1 %v257_v22  ;;  %v259_v27 = vmax.f32 %v241_v23, 0.0 }
  0xfb   :  { %v258_v26 = vmax.f32 %v236_v25, 0.0 }
  0xfd   :  { %610 = vmatprep.mubr.f32.mxu1 %v258_v26 }
  0xfe   :  { %611 = vmatmul.mubr.f32.gmra.mrb[8].mxu1 %v259_v27 }
 0x1b5   :  { %v591_v29 = vpop.f32.mrb[16].mxu0 }
 0x1b6   :  { %v355_v30 = vadd.f32 %v591_v29, %v478_v28  ;;  %v349_v31 = vpop.f32.mrb[17].mxu0 }
 0x1b7   :  { %v350_v32 = vadd.f32 %v478_v28, %v349_v31 }
 0x1b8   :  { %429 = vst [vmem:[#allocation2 + $0x8] sm:$0xff] %v355_v30 }
 0x1b9   :  { %428 = vst [vmem:[#allocation2] sm:$0xff] %v350_v32  ;;  %v594_v33 = vpop.f32.mrb[18].mxu0 }
 0x1ba   :  { %v365_v34 = vadd.f32 %v594_v33, %v478_v28  ;;  %v359_v35 = vpop.f32.mrb[19].mxu0 }
 0x1bb   :  { %v360_v36 = vadd.f32 %v478_v28, %v359_v35 }
 0x1bc   :  { %431 = vst [vmem:[#allocation2 + $0x18] sm:$0xff] %v365_v34 }
 0x1bd   :  { %430 = vst [vmem:[#allocation2 + $0x10] sm:$0xff] %v360_v36  ;;  %v597_v37 = vpop.f32.mrb[20].mxu0 }
 0x1be   :  { %v375_v38 = vadd.f32 %v597_v37, %v478_v28  ;;  %v369_v39 = vpop.f32.mrb[21].mxu0 }
 0x1bf   :  { %v370_v40 = vadd.f32 %v478_v28, %v369_v39 }
 0x1c0   :  { %433 = vst [vmem:[#allocation2 + $0x28] sm:$0xff] %v375_v38 }
 0x1c1   :  { %432 = vst [vmem:[#allocation2 + $0x20] sm:$0xff] %v370_v40  ;;  %v600_v41 = vpop.f32.mrb[0].mxu1 }
 0x1c2   :  { %v385_v42 = vadd.f32 %v600_v41, %v478_v28  ;;  %v379_v43 = vpop.f32.mrb[1].mxu1 }
 0x1c3   :  { %v380_v44 = vadd.f32 %v478_v28, %v379_v43 }
 0x1c4   :  { %435 = vst [vmem:[#allocation2 + $0x38] sm:$0xff] %v385_v42 }
 0x1c5   :  { %434 = vst [vmem:[#allocation2 + $0x30] sm:$0xff] %v380_v44  ;;  %v603_v45 = vpop.f32.mrb[2].mxu1 }
 0x1c6   :  { %v395_v46 = vadd.f32 %v603_v45, %v478_v28  ;;  %v389_v47 = vpop.f32.mrb[3].mxu1 }
 0x1c7   :  { %v390_v48 = vadd.f32 %v478_v28, %v389_v47 }
 0x1c8   :  { %437 = vst [vmem:[#allocation2 + $0x48] sm:$0xff] %v395_v46 }
 0x1c9   :  { %436 = vst [vmem:[#allocation2 + $0x40] sm:$0xff] %v390_v48  ;;  %v606_v49 = vpop.f32.mrb[4].mxu1 }
 0x1ca   :  { %v405_v50 = vadd.f32 %v606_v49, %v478_v28  ;;  %v399_v51 = vpop.f32.mrb[5].mxu1 }
 0x1cb   :  { %v400_v52 = vadd.f32 %v478_v28, %v399_v51 }
 0x1cc   :  { %439 = vst [vmem:[#allocation2 + $0x58] sm:$0xff] %v405_v50 }
 0x1cd   :  { %438 = vst [vmem:[#allocation2 + $0x50] sm:$0xff] %v400_v52  ;;  %v609_v53 = vpop.f32.mrb[6].mxu1 }
 0x1ce   :  { %v415_v54 = vadd.f32 %v609_v53, %v478_v28  ;;  %v409_v55 = vpop.f32.mrb[7].mxu1 }
 0x1cf   :  { %v410_v56 = vadd.f32 %v478_v28, %v409_v55 }
 0x1d0   :  { %441 = vst [vmem:[#allocation2 + $0x68] sm:$0xff] %v415_v54 }
 0x1d1   :  { %440 = vst [vmem:[#allocation2 + $0x60] sm:$0xff] %v410_v56  ;;  %v612_v57 = vpop.f32.mrb[8].mxu1 }
 0x1d2   :  { %v425_v58 = vadd.f32 %v612_v57, %v478_v28  ;;  %v419_v59 = vpop.f32.mrb[9].mxu1 }
 0x1d3   :  { %v420_v60 = vadd.f32 %v478_v28, %v419_v59 }
 0x1d4   :  { %443 = vst [vmem:[#allocation2 + $0x78] sm:$0xff] %v425_v58 }
 0x1d5   :  { %442 = vst [vmem:[#allocation2 + $0x70] sm:$0xff] %v420_v60 }
 0x1d6   :  { %682 = shalt.err (!%p679_p4)
}
 0x1d7   :  { %s683_s13 = scalar_lea.hbm %s870_s5, 2048 }
 0x1d8   :  { %p684_p5 = scmp.ne.s32.totalorder %s870_s5, %s683_s13  ;;  %p687_p6 = scmp.lt.u32.totalorder %s683_s13, %s870_s5 }
 0x1da   :  { %p689_p7 = pnand %p687_p6, %p684_p5 }
 0x1dc   :  { %692 = shalt.err (!%p689_p7)
}
 0x1dd   :  { %s697_s18 = smov 128   ;;  %s698_s19 = smov 8  }
 0x1de   :  { %455 = dma.vmem_to_hbm [thread:$0]  %s450_s9, 2048, %s870_s5, [#allocation3], %s697_s18, %s697_s18, %s698_s19  }
 0x1df   :  { %693 = dma.done.wait [#allocation3], 2048  }
 0x1e0   :  { %694 = vsyncadd [#allocation3], 4294965248 }
 0x1e1   :  { %459 = vsyncpa [#allocation3], 1 }

</bundles_post_ra>
